<compile_context>
chip_gen: v5e
topology: v5e:2x2
jax: 0.10.0
libtpu: 0.0.40
codegen_flags: <defaults>
</compile_context>

<pallas_src>
import functools

import jax
import jax.numpy as jnp
import numpy as np
from jax.experimental import pallas as pl
from jax.experimental.pallas import tpu as pltpu

_MIB = 1024 * 1024


def _round_up(x, m):
    return ((x + m - 1) // m) * m


def _vmem_limit(need_bytes):
    # Floor at the v6e/v7x default scoped limit (32 MiB), cap at v7x's 64 MiB
    # physical VMEM so the request is valid on every generation.
    return int(min(64 * _MIB, max(32 * _MIB, 2 * int(need_bytes))))


# ----------------------------- projection kernel -----------------------------
def _project_kernel(x_ref, wT_ref, b_ref, h_ref):
    """H = X @ W.T + b (lane-padded).

    The wrapper pads wT with zero columns and sets b_pad[c_out] = 1, so lane
    `c_out` of H is an all-ones column "for free" out of this matmul; the
    aggregation kernel reads the node degree from that lane.
    """
    x = x_ref[0].astype(jnp.float32)                      # (tile_p, c_in)
    h = jnp.dot(x, wT_ref[...], preferred_element_type=jnp.float32) + b_ref[...]
    h_ref[0] = h.astype(h_ref.dtype)


# ----------------------------- aggregation kernel ----------------------------
def _aggregate_kernel(adj_ref, h_ref, o_ref, *, c_out):
    """out = (adj @ H) / deg, with deg taken from lane `c_out` of the matmul."""
    adj = adj_ref[0].astype(jnp.float32)                  # bf16 0/1 -> f32 exact
    agg = jnp.dot(adj, h_ref[0], preferred_element_type=jnp.float32)
    deg = agg[:, c_out:c_out + 1]                         # MXU-accumulated degree
    # Exact reciprocal (approx=True would move it to the EUP at a few-ulp cost).
    # NOTE: rows with deg == 0 produce inf/nan, matching the PyTorch module
    # (identity connections are assumed to be added upstream).
    o_ref[0] = (agg * pl.reciprocal(deg, approx=False)).astype(o_ref.dtype)


# --------------------------------- wrapper -----------------------------------
def gcn_layer_forward(node_feats, adj_matrix, weight, bias, *, tile_n=None):
    """Pallas implementation of GCNLayer.forward.

    node_feats : (B, N, c_in)
    adj_matrix : (B, N, N)  -- 0/1 values; bf16 is lossless and halves HBM traffic
    weight     : (c_out, c_in)   (PyTorch nn.Linear layout)
    bias       : (c_out,)
    returns    : (B, N, c_out)
    """
    B, N, c_in = node_feats.shape
    c_out = weight.shape[0]
    assert adj_matrix.shape == (B, N, N)
    out_dtype = node_feats.dtype

    # Lane-dense width: c_out padded to a multiple of 128, with one extra lane
    # (index c_out) reserved for the all-ones degree column.
    h_width = _round_up(c_out + 1, 128)

    # Row tiling: (8,128)-friendly; pad N instead of streaming a full (N, N) block.
    if N >= 128:
        n_pad = _round_up(N, 128)
        if tile_n is None:
            tile_n = 256 if n_pad % 256 == 0 else 128
    else:
        n_pad = _round_up(N, 16)
        if tile_n is None:
            tile_n = n_pad
    assert n_pad % tile_n == 0, "n_pad must be divisible by tile_n"
    tile_p = tile_n

    if n_pad != N:
        node_feats = jnp.pad(node_feats, ((0, 0), (0, n_pad - N), (0, 0)))
        adj_matrix = jnp.pad(adj_matrix, ((0, 0), (0, n_pad - N), (0, n_pad - N)))

    # Padded weight / bias. b_pad[c_out] = 1 plants the ones column of H.
    wT_pad = (
        jnp.zeros((c_in, h_width), jnp.float32)
        .at[:, :c_out].set(jnp.transpose(weight).astype(jnp.float32))
    )
    b_pad = (
        jnp.zeros((1, h_width), jnp.float32)
        .at[0, :c_out].set(bias.astype(jnp.float32))
        .at[0, c_out].set(1.0)
    )

    # ---------------- projection: H = X @ W.T + b (plus ones column) ----------
    proj_cost = pl.CostEstimate(
        flops=int(2 * B * n_pad * c_in * h_width),
        transcendentals=0,
        bytes_accessed=int(
            4 * (B * n_pad * c_in + c_in * h_width + h_width + B * n_pad * h_width)
        ),
    )
    proj_need = 4 * (2 * tile_p * c_in + c_in * h_width + h_width
                     + 2 * tile_p * h_width)
    h = pl.pallas_call(
        _project_kernel,
        out_shape=jax.ShapeDtypeStruct((B, n_pad, h_width), jnp.float32),
        grid_spec=pltpu.PrefetchScalarGridSpec(
            num_scalar_prefetch=0,
            grid=(B, n_pad // tile_p),
            in_specs=[
                pl.BlockSpec((1, tile_p, c_in), lambda b, i: (b, i, 0)),
                pl.BlockSpec((c_in, h_width), lambda b, i: (0, 0)),
                pl.BlockSpec((1, h_width), lambda b, i: (0, 0)),
            ],
            out_specs=pl.BlockSpec((1, tile_p, h_width), lambda b, i: (b, i, 0)),
        ),
        compiler_params=pltpu.CompilerParams(
            dimension_semantics=("parallel", "parallel"),
            vmem_limit_bytes=_vmem_limit(proj_need),
        ),
        cost_estimate=proj_cost,
    )(node_feats, wT_pad, b_pad)

    # ---------------- aggregation: out = (adj @ H) / deg ----------------------
    adj_itemsize = jnp.dtype(adj_matrix.dtype).itemsize
    agg_cost = pl.CostEstimate(
        flops=int(2 * B * n_pad * n_pad * h_width),
        transcendentals=0,
        bytes_accessed=int(
            B * n_pad * n_pad * adj_itemsize + 2 * 4 * B * n_pad * h_width
        ),
    )
    agg_need = (2 * tile_n * n_pad * adj_itemsize   # double-buffered adj tiles
                + 2 * n_pad * h_width * 4           # H block (resident per batch)
                + 2 * tile_n * h_width * 4)         # double-buffered out tiles
    out = pl.pallas_call(
        functools.partial(_aggregate_kernel, c_out=c_out),
        out_shape=jax.ShapeDtypeStruct((B, n_pad, h_width), out_dtype),
        grid_spec=pltpu.PrefetchScalarGridSpec(
            num_scalar_prefetch=0,
            grid=(B, n_pad // tile_n),
            in_specs=[
                # adjacency row tiles: the dominant HBM stream (bf16-friendly)
                pl.BlockSpec((1, tile_n, n_pad), lambda b, i: (b, i, 0)),
                # projected features: only re-DMA'd when the batch index changes
                pl.BlockSpec((1, n_pad, h_width), lambda b, i: (b, 0, 0)),
            ],
            out_specs=pl.BlockSpec((1, tile_n, h_width), lambda b, i: (b, i, 0)),
        ),
        compiler_params=pltpu.CompilerParams(
            dimension_semantics=("parallel", "parallel"),
            vmem_limit_bytes=_vmem_limit(agg_need),
        ),
        cost_estimate=agg_cost,
    )(adj_matrix, h)

    # Drop padded rows and the padded / degree lanes.
    return out[:, :N, :c_out]


def _reference_forward(node_feats, adj_matrix, weight, bias):
    """Float64 numpy re-derivation of the PyTorch forward, for verification."""
    x = np.asarray(node_feats, dtype=np.float64)
    a = np.asarray(adj_matrix, dtype=np.float64)
    w = np.asarray(weight, dtype=np.float64)
    b = np.asarray(bias, dtype=np.float64)
    h = x @ w.T + b
    agg = a @ h
    deg = a.sum(-1, keepdims=True)
    return agg / deg


if __name__ == "__main__":
    # Small shapes consistent with the module: a batch of graphs with N nodes.
    B, N, c_in, c_out = 2, 16, 8, 8

    key = jax.random.PRNGKey(0)
    k1, k2, k3, k4 = jax.random.split(key, 4)

    node_feats = jax.random.normal(k1, (B, N, c_in), dtype=jnp.float32)

    # Random 0/1 adjacency with identity connections added (so deg >= 1).
    adj = (jax.random.uniform(k2, (B, N, N)) < 0.4).astype(jnp.float32)
    adj = jnp.maximum(adj, jnp.eye(N, dtype=jnp.float32)[None])

    weight = jax.random.normal(k3, (c_out, c_in), dtype=jnp.float32) * 0.3
    bias = jax.random.normal(k4, (c_out,), dtype=jnp.float32) * 0.1

    # 0/1 adjacency is exactly representable in bf16: halves the dominant
    # HBM stream into the aggregation kernel, numerics stay f32-exact.
    adj_bf16 = adj.astype(jnp.bfloat16)

    out = gcn_layer_forward(node_feats, adj_bf16, weight, bias)
    out = jax.block_until_ready(out)

    ref = _reference_forward(node_feats, adj, weight, bias)

    assert out.shape == (B, N, c_out)
    out_np = np.asarray(out, dtype=np.float64)
    assert np.all(np.isfinite(out_np))
    max_err = np.max(np.abs(out_np - ref))
    assert np.allclose(out_np, ref, rtol=1e-4, atol=1e-4), max_err

    print("KERNEL_OK")
</pallas_src>

<mosaic_0001>
module attributes {stable_mosaic.version = 11 : i64} {
  func.func @_project_kernel(%arg0: i32, %arg1: i32, %arg2: memref<1x16x8xf32, #tpu.memory_space<vmem>>, %arg3: memref<8x128xf32, #tpu.memory_space<vmem>>, %arg4: memref<1x128xf32, #tpu.memory_space<vmem>>, %arg5: memref<1x16x128xf32, #tpu.memory_space<vmem>>) attributes {dimension_semantics = [#tpu.dimension_semantics<parallel>, #tpu.dimension_semantics<parallel>], iteration_bounds = array<i64: 2, 1>, scalar_prefetch = 0 : i64, scratch_operands = 0 : i64, tpu.core_type = #tpu.core_type<tc>, window_params = [{transform_indices = @transform_0, window_bounds = array<i64: 1, 16, 8>}, {pipeline_mode = #tpu.pipeline_mode<synchronous>, transform_indices = @transform_1, window_bounds = array<i64: 8, 128>}, {pipeline_mode = #tpu.pipeline_mode<synchronous>, transform_indices = @transform_2, window_bounds = array<i64: 1, 128>}, {transform_indices = @transform_3, window_bounds = array<i64: 1, 16, 128>}]} {
    %c0 = arith.constant 0 : index
    %c0_0 = arith.constant 0 : index
    %c0_1 = arith.constant 0 : index
    %0 = vector.load %arg2[%c0, %c0_0, %c0_1] : memref<1x16x8xf32, #tpu.memory_space<vmem>>, vector<1x16x8xf32>
    %1 = vector.shape_cast %0 : vector<1x16x8xf32> to vector<16x8xf32>
    %c0_2 = arith.constant 0 : index
    %c0_3 = arith.constant 0 : index
    %2 = vector.load %arg3[%c0_2, %c0_3] : memref<8x128xf32, #tpu.memory_space<vmem>>, vector<8x128xf32>
    %cst = arith.constant dense<0.000000e+00> : vector<16x128xf32>
    %3 = tpu.matmul %1, %2, %cst {dimension_numbers = #tpu.dot_dimension_numbers<[1], [0], [0], [1], [0, 0, 1, 1], [], []>} : vector<16x8xf32>, vector<8x128xf32>, vector<16x128xf32> -> vector<16x128xf32>
    %c0_4 = arith.constant 0 : index
    %c0_5 = arith.constant 0 : index
    %4 = vector.load %arg4[%c0_4, %c0_5] : memref<1x128xf32, #tpu.memory_space<vmem>>, vector<1x128xf32>
    %5 = vector.broadcast %4 : vector<1x128xf32> to vector<16x128xf32>
    %6 = arith.addf %3, %5 : vector<16x128xf32>
    %c0_6 = arith.constant 0 : index
    %c0_7 = arith.constant 0 : index
    %c0_8 = arith.constant 0 : index
    %7 = vector.load %arg5[%c0_6, %c0_7, %c0_8] : memref<1x16x128xf32, #tpu.memory_space<vmem>>, vector<1x16x128xf32>
    %8 = vector.shape_cast %7 : vector<1x16x128xf32> to vector<16x128xf32>
    %9 = vector.shape_cast %6 : vector<16x128xf32> to vector<1x16x128xf32>
    tpu.vector_store %arg5[%c0_6, %c0_7, %c0_8], %9 {strides = array<i32>} : memref<1x16x128xf32, #tpu.memory_space<vmem>>, vector<1x16x128xf32>,
    return
  }
  func.func @transform_0(%arg0: i32, %arg1: i32) -> (i32, i32, i32) {
    %c0_i32 = arith.constant 0 : i32
    %c0_i32_0 = arith.constant 0 : i32
    return %arg0, %arg1, %c0_i32 : i32, i32, i32
  }
  func.func @transform_1(%arg0: i32, %arg1: i32) -> (i32, i32) {
    %c0_i32 = arith.constant 0 : i32
    %c0_i32_0 = arith.constant 0 : i32
    %c0_i32_1 = arith.constant 0 : i32
    return %c0_i32, %c0_i32_0 : i32, i32
  }
  func.func @transform_2(%arg0: i32, %arg1: i32) -> (i32, i32) {
    %c0_i32 = arith.constant 0 : i32
    %c0_i32_0 = arith.constant 0 : i32
    %c0_i32_1 = arith.constant 0 : i32
    return %c0_i32, %c0_i32_0 : i32, i32
  }
  func.func @transform_3(%arg0: i32, %arg1: i32) -> (i32, i32, i32) {
    %c0_i32 = arith.constant 0 : i32
    %c0_i32_0 = arith.constant 0 : i32
    return %arg0, %arg1, %c0_i32 : i32, i32, i32
  }
}

</mosaic_0001>

<bundles_post_ra>
// kernel: tpu_custom_call.1
= control target key start
LH: loop header
LB: loop body
LE: loop exit
PB: predicated region body
PF: predicated region fallthrough
CT: control target
= control target key end

     0   :  { %8 = vsyncpa [#allocation3], 0  ;;  %s617_s0 = inlined_call_operand.vmem [shape: f32[2,16,8], index: 0, kind: input, shape index: {}]   ;;  %s618_s1 = inlined_call_operand.vmem [shape: f32[8,128], index: 1, kind: input, shape index: {}]   ;;  %s619_s2 = inlined_call_operand.vmem [shape: f32[1,128], index: 2, kind: input, shape index: {}]   ;;  %s620_s3 = inlined_call_operand.hbm [shape: f32[2,16,128], index: 3, kind: output, shape index: {}]  }
   0x1   :  { %10 = vsyncpa [#allocation3 + $0x1], 0  ;;  %s514_s12 = smov 0   ;;  %s516_s13 = smov 0  }
   0x2   :  { %s518_s14 = smov 0   ;;  %s520_s15 = smov 0  }
   0x3   :  { %s522_s16 = smov 0   ;;  %s524_s17 = smov 0  }
   0x4 LB: > { %s336_s18 = sadd.s32 4294967295, %s490_s17   ;;  %s337_s19 = sadd.s32 4294967294, %s490_s17   ;;  %s490_s17 = sphi %s524_s17, %s16_s17   ;;  %s486_s16 = sphi %s522_s16, %s627_s16   ;;  %s482_s15 = sphi %s520_s15, %s626_s15   ;;  %s478_s14 = sphi %s518_s14, %s625_s14   ;;  %s474_s13 = sphi %s516_s13, %s624_s13   ;;  %s470_s12 = sphi %s514_s12, %s623_s12  }
   0x5   : > { %s28_s20 = sadd.s32 1, %s486_s16  ;;  %s107_s21 = sadd.s32 1, %s478_s14 }
   0x6   : > { %p30_p0 = scmp.ge.s32.totalorder %s28_s20, 2  ;;  %p117_p1 = scmp.ne.s32.totalorder %s478_s14, %s474_s13 }
   0x7   : > { %p118_p2 = scmp.eq.s32.totalorder %s336_s18, 1  ;;  %p123_p3 = scmp.ne.s32.totalorder %s474_s13, %s470_s12 }
   0x8   : > { %s629_s20 = smov (%p30_p0, %s28_s20), 0  ;;  %p124_p5 = scmp.eq.s32.totalorder %s337_s19, 1 }
   0x9   : > { %p554_p4 = por %p118_p2, %p117_p1  ;;  %s102_s23 = ssub.s32 %s486_s16, %s629_s20 }
   0xa   : > { %p340_p6 = scmp.ge.s32.totalorder %s490_s17, 1  ;;  %p105_p7 = scmp.eq.s32.totalorder %s102_s23, 0 }
   0xb   : > { %p561_p8 = por %p124_p5, %p123_p3  ;;  %p161_p9 = scmp.lt.s32.totalorder %s490_s17, 3 }
   0xc   : > { %s567_s25 = scalar_select %p105_p7, %s478_s14, %s107_s21  }
   0xd   : > { %p162_p10 = pnand %p340_p6, %p161_p9 }
   0xe   : > { %p190_p11 = scmp.lt.s32.totalorder (!%p162_p10), %s482_s15, 1  ;;  %s186_s6 = sand.u32 (!%p162_p10), 1, %s474_s13  }
   0xf   : > { %165 = sbr.rel (%p162_p10) target bundleno = 158 (0x9e), region = 32  ;;  %s341_s7 = sshll.u32 (!%p162_p10), %s186_s6, 4 }
  0x10   : > { %s352_s8 = sshll.u32 (!%p162_p10), %s482_s15, 4  ;;  %s188_s21 = scalar_lea.vmem (!%p162_p10), [#allocation2], %s341_s7 }
  0x11   : > { %s253_s11 = scalar_lea.hbm (!%p162_p10), %s620_s3, %s352_s8  ;;  %s254_s23 = sshll.u32 (!%p162_p10), %s188_s21, 4  ;;  %s255_s23 = int_to_ptr.vmem [resolvable:$true] %s254_s23 }
  0x12   : > { %s256_s26 = sshll.u32 (!%p162_p10), %s253_s11, 4  ;;  %s432_s4 = scalar_lea.hbm (!%p162_p10), %s620_s3, 32  ;;  %s257_s26 = int_to_ptr.hbm [resolvable:$true] %s256_s26 }
  0x13   : > { %s426_s27 = sshra.s32 (!%p162_p10), %s257_s26, 4  ;;  %s427_s27 = int_to_ptr.hbm [resolvable:$true] %s426_s27 }
  0x14   : > { %v202_v0 = vld [vmem:[%s618_s1] sm:$0xff]  ;;  %s191_s28 = scalar_select %p190_p11, %s482_s15, 1  ;;  %vm207_vm0 = vcmask 64512  }
  0x15   : > { %229 = vmatpush.msra.mxu0 %v202_v0  ;;  %353 = vmatpush.msra.mxu1 %v202_v0  ;;  %v411_v3 = vld [vmem:[%s619_s2] ss:$0 sm:$0xff]  ;;  %s240_s15 = scalar_lea.sflag [#allocation3], %s186_s6  ;;  %p433_p1 = scmp.lt.s32.totalorder %s427_s27, %s620_s3 }
  0x16   : > { %s351_s29 = sshll.u32 %s191_s28, 4  ;;  %s428_s28 = scalar_lea.hbm %s427_s27, 16 }
  0x17   : > { %s197_s5 = scalar_lea.vmem %s617_s0, %s351_s29  ;;  %p429_p12 = scmp.ne.s32.totalorder %s427_s27, %s428_s28 }
  0x18   : > { %v200_v1 = vld [vmem:[%s197_s5] sm:$0xff]  ;;  %v201_v2 = vld [vmem:[%s197_s5 + $0x8] sm:$0xff]  ;;  %p434_p2 = scmp.lt.s32.totalorder %s432_s4, %s428_s28 }
  0x19   : > { %344 = vmatmul.msk.f32.vlgmr.msra.gmra.mxu0 %vm207_vm0, %v200_v1  ;;  %345 = vmatmul.msk.f32.vlgmr.msra.gmra.mxu1 %vm207_vm0, %v201_v2  ;;  %p430_p13 = pnand %p429_p12, %p554_p4 }
  0x1a   : > { %p435_p3 = por %p434_p2, %p433_p1 }
  0x1b   : > { %p431_p0 = pneg %p430_p13 }
  0x1d   : > { %p436_p5 = pnand %p435_p3, %p431_p0 }
  0x96   : > { %v231_v4 = vpop.f32.mrf.mxu0  ;;  %v234_v5 = vpop.f32.mrf.mxu1 }
  0x97   : > { %v232_v6 = vadd.f32 %v411_v3, %v231_v4  ;;  %v235_v7 = vadd.f32 %v411_v3, %v234_v5 }
  0x99   : > { %237 = vst [vmem:[%s188_s21] sm:$0xff] %v232_v6 }
  0x9a   : > { %238 = vst [vmem:[%s188_s21 + $0x8] sm:$0xff] %v235_v7 }
  0x9b   : > { %439 = shalt.err (!%p436_p5)
}
  0x9c   : > { %s492_s6 = smov 128   ;;  %s493_s8 = smov 8  }
  0x9d   : > { %354 = dma.vmem_to_hbm [thread:$0]  (%p554_p4), %s255_s23, 256, %s257_s26, %s240_s15, %s492_s6, %s492_s6, %s493_s8  }
  0x9e PF: > { %p360_p6 = scmp.ge.s32.totalorder %s490_s17, 2  ;;  %s271_s9 = sand.u32 1, %s470_s12  }
  0x9f   : > { %s272_s10 = scalar_lea.sflag [#allocation3], %s271_s9 }
  0xa0   : > { %p357_p7 = pnand %p360_p6, %p561_p8 }
  0xa2   : > { %p358_p9 = pneg %p357_p7 }
  0xa4   : > { %465 = dma.done.wait (%p358_p9), %s272_s10, 256  }
  0xa5   : > { %467 = vsyncadd (%p358_p9), %s272_s10, 4294967040  ;;  %s16_s17 = sadd.s32 1, %s490_s17   ;;  %s623_s12 = smov %s474_s13 }
  0xa6   : > { %p13_p10 = scmp.ge.s32.totalorder %s16_s17, 4   ;;  %s624_s13 = smov %s478_s14 }
  0xa7   : > { %s625_s14 = smov %s567_s25  ;;  %s626_s15 = smov %s486_s16 }
  0xa8   : > { %s627_s16 = smov %s629_s20  ;;  %15 = sbr.rel (!%p13_p10) target bundleno = 4 (0x4), region = 67 }
  0xad   :  { %278 = vsyncpa [#allocation3], 1 }
  0xae   :  { %280 = vsyncpa [#allocation3 + $0x1], 1 }

</bundles_post_ra>
